<compile_context>
chip_gen: v6e
topology: v6e:2x2x1
jax: 0.10.0
libtpu: 0.0.40
codegen_flags: <defaults>
</compile_context>

<pallas_src>
import functools

import jax
import jax.numpy as jnp
from jax import lax
from jax.experimental import pallas as pl
from jax.experimental.pallas import tpu as pltpu

GN_GROUPS = 32
GN_EPS = 1e-5


def _physical_vmem_bytes():
    """Per-core VMEM capacity; conservative fallback if the query fails."""
    try:
        info = pltpu.get_tpu_info()
        v = getattr(info, "vmem_capacity_bytes", None)
        if v:
            return int(v)
    except Exception:
        pass
    return 64 * 1024 * 1024        # v7x per-TensorCore worst case


def _round_up(x, m):
    return ((x + m - 1) // m) * m


# ---------------------------------------------------------------------------
# Kernel A (fused, one HBM pass of x per image):
#   pool -> conv_atten -> GroupNorm(32) -> sigmoid -> scale-folded 1x1 conv
# ---------------------------------------------------------------------------
def _fsm_fused_kernel(w_atten_t_ref, mavg_ref, mexp_ref, gamma_ref, beta_ref,
                      w_conv_ref, x_ref, o_ref, *, inv_hw, eps):
    x = x_ref[0]                                                    # (Cin, HWp)
    cin = x.shape[0]

    # Global average pool (padded columns are zero; divide by the true HW).
    pooled_col = jnp.sum(x.astype(jnp.float32), axis=1,
                         keepdims=True) * inv_hw                    # (Cin, 1)

    # (Cin,1) column -> (1,Cin) row without transpose/reshape: mask with an
    # iota-built identity and reduce over sublanes (VPU + XLU, tiny).
    eye = (lax.broadcasted_iota(jnp.int32, (cin, cin), 0) ==
           lax.broadcasted_iota(jnp.int32, (cin, cin), 1)).astype(jnp.float32)
    pooled_row = jnp.sum(pooled_col * eye, axis=0, keepdims=True)   # (1, Cin)

    # 1x1 conv_atten (no bias): a = pooled @ W_atten^T   (all f32)
    a = jnp.dot(pooled_row, w_atten_t_ref[...],
                preferred_element_type=jnp.float32)                 # (1, Cin)

    # GroupNorm(32): per-group mean/var via membership matmuls (no reshape).
    gmean = jnp.dot(a, mavg_ref[...], preferred_element_type=jnp.float32)      # (1, G)
    mean_c = jnp.dot(gmean, mexp_ref[...], preferred_element_type=jnp.float32)  # (1, Cin)
    cent = a - mean_c
    gvar = jnp.dot(cent * cent, mavg_ref[...], preferred_element_type=jnp.float32)
    var_c = jnp.dot(gvar, mexp_ref[...], preferred_element_type=jnp.float32)
    gn = cent * lax.rsqrt(var_c + eps) * gamma_ref[...] + beta_ref[...]
    scale = 1.0 + jax.nn.sigmoid(gn)                                # (1, Cin) in [1,2]

    # Fold (x + x*atten) -> 1x1 conv into per-input-channel scaled weights.
    # Fold in f32, single cast afterwards (avoids double rounding for bf16).
    w_scaled = (w_conv_ref[...] * scale).astype(x.dtype)            # (Cout, Cin)
    o_ref[0] = jnp.dot(w_scaled, x,
                       preferred_element_type=jnp.float32).astype(o_ref.dtype)


# ---------------------------------------------------------------------------
# Kernel B1 (two-pass fallback, pass 1): per-(n, c) spatial sum, accumulated
# across HW tiles; an optional leading split axis keeps both TensorCores busy
# when N == 1.
# ---------------------------------------------------------------------------
def _pool_kernel(x_ref, out_ref):
    # x_ref: (1, Cin, T); out_ref: (1, 1, Cin, 1), resident across the T axis.
    @pl.when(pl.program_id(2) == 0)
    def _():
        out_ref[...] = jnp.zeros_like(out_ref)

    out_ref[0] += jnp.sum(x_ref[...].astype(jnp.float32), axis=2, keepdims=True)


# ---------------------------------------------------------------------------
# Kernel B2 (two-pass fallback, pass 2): pure MXU matmul per tile; the
# per-image scale is already folded into the weights in the wrapper.
# ---------------------------------------------------------------------------
def _fsm_stream_kernel(w_ref, x_ref, o_ref):
    # w_ref: (1, Cout, Cin); x_ref: (1, Cin, T); o_ref: (1, Cout, T)
    o_ref[0] = jnp.dot(w_ref[0], x_ref[0],
                       preferred_element_type=jnp.float32).astype(o_ref.dtype)


@functools.partial(jax.jit, static_argnames=("compute_dtype", "out_dtype",
                                              "spatial_tile_target",
                                              "force_two_pass"))
def feature_selection_module(x_nchw, w_atten, gn_gamma, gn_beta, w_conv, *,
                             compute_dtype=jnp.bfloat16, out_dtype=None,
                             spatial_tile_target=None, force_two_pass=False):
    """x_nchw: (N, Cin, H, W).  Returns (N, Cout, H, W) in out_dtype (default: x dtype)."""
    N, Cin, H, W = x_nchw.shape
    Cout = w_conv.shape[0]
    HW = H * W
    assert Cin % GN_GROUPS == 0, "GroupNorm(32) requires in_chan % 32 == 0"

    cdt = jnp.dtype(compute_dtype)
    odt = jnp.dtype(out_dtype) if out_dtype is not None else x_nchw.dtype
    xb, ob = cdt.itemsize, odt.itemsize

    # ---- per-generation VMEM budget / spatial tile target -------------------
    phys = _physical_vmem_bytes()
    cap = int(phys * 0.75)                       # headroom for compiler scratch
    tile_target = (spatial_tile_target if spatial_tile_target is not None
                   else (8192 if phys >= (100 << 20) else 4096))

    # ---- lane-dense layout: flatten HW onto lanes, zero-pad to 128 ----------
    HWp = _round_up(HW, 128)
    x3 = x_nchw.reshape(N, Cin, HW).astype(cdt)
    if HWp != HW:
        # Zero padding does not perturb the pool (divided by true HW) and the
        # padded output columns are sliced off below.
        x3 = jnp.pad(x3, ((0, 0), (0, 0), (0, HWp - HW)))

    w_conv_f32 = w_conv.astype(jnp.float32)

    # ---- fused-path feasibility: whole (Cin, HWp) image resident in VMEM ----
    fused_need = (2 * Cin * HWp * xb                     # x blocks (double-buffered)
                  + 2 * Cout * HWp * ob                  # out blocks (double-buffered)
                  + Cout * HWp * 4                       # f32 matmul result temp
                  + (Cin * HWp * 4 if xb < 4 else 0)     # f32 cast temp for the pool
                  + 3 * Cin * Cin * 4 + 2 * Cout * Cin * 4
                  + (2 << 20))                           # slack
    use_fused = (not force_two_pass) and fused_need <= cap

    if use_fused:
        vmem_limit = int(min(cap, max(48 << 20, fused_need + (16 << 20))))
        gsz = Cin // GN_GROUPS
        member = jax.nn.one_hot(jnp.arange(Cin) // gsz, GN_GROUPS,
                                dtype=jnp.float32)                  # (Cin, G)
        mavg = member / gsz                                         # group-mean matrix
        mexp = jnp.transpose(member)                                # group-expand matrix

        out3 = pl.pallas_call(
            functools.partial(_fsm_fused_kernel, inv_hw=1.0 / HW, eps=GN_EPS),
            out_shape=jax.ShapeDtypeStruct((N, Cout, HWp), odt),
            grid_spec=pltpu.PrefetchScalarGridSpec(
                num_scalar_prefetch=0,
                grid=(N,),
                in_specs=[
                    pl.BlockSpec((Cin, Cin), lambda n: (0, 0)),         # W_atten^T (f32)
                    pl.BlockSpec((Cin, GN_GROUPS), lambda n: (0, 0)),   # group avg
                    pl.BlockSpec((GN_GROUPS, Cin), lambda n: (0, 0)),   # group expand
                    pl.BlockSpec((1, Cin), lambda n: (0, 0)),           # gamma
                    pl.BlockSpec((1, Cin), lambda n: (0, 0)),           # beta
                    pl.BlockSpec((Cout, Cin), lambda n: (0, 0)),        # W_conv (f32)
                    pl.BlockSpec((1, Cin, HWp), lambda n: (n, 0, 0)),   # x
                ],
                out_specs=pl.BlockSpec((1, Cout, HWp), lambda n: (n, 0, 0)),
            ),
            compiler_params=pltpu.CompilerParams(
                dimension_semantics=("parallel",),
                vmem_limit_bytes=vmem_limit),
        )(jnp.transpose(w_atten).astype(jnp.float32), mavg, mexp,
          gn_gamma.reshape(1, Cin).astype(jnp.float32),
          gn_beta.reshape(1, Cin).astype(jnp.float32),
          w_conv_f32, x3)

    else:
        # ---- two-pass fallback (x too large to stay resident) ---------------
        def stream_need(t):
            return (2 * Cin * t * xb + 2 * Cout * t * ob + Cout * t * 4
                    + 2 * Cout * Cin * xb
                    + (Cin * t * 4 if xb < 4 else 0)
                    + (2 << 20))

        cands = sorted({t for t in range(128, HWp + 1, 128)
                        if HWp % t == 0 and t <= max(tile_target, 128)},
                       reverse=True)
        t_hw = 128
        for t in cands:
            if stream_need(t) <= cap:
                t_hw = t
                break
        num_t = HWp // t_hw
        vmem_limit = int(min(cap, max(48 << 20, stream_need(t_hw) + (16 << 20))))

        # Pass 1: global average pool.  Split the reduction in two when N == 1
        # so dual-TensorCore parts get a second parallel grid axis.
        n_split = 2 if (N == 1 and num_t >= 2 and num_t % 2 == 0) else 1
        num_t_inner = num_t // n_split
        pooled_sum = pl.pallas_call(
            _pool_kernel,
            out_shape=jax.ShapeDtypeStruct((n_split, N, Cin, 1), jnp.float32),
            grid_spec=pltpu.PrefetchScalarGridSpec(
                num_scalar_prefetch=0,
                grid=(n_split, N, num_t_inner),
                in_specs=[pl.BlockSpec(
                    (1, Cin, t_hw),
                    lambda s, n, t: (n, 0, s * num_t_inner + t))],
                out_specs=pl.BlockSpec((1, 1, Cin, 1),
                                       lambda s, n, t: (s, n, 0, 0)),
            ),
            compiler_params=pltpu.CompilerParams(
                dimension_semantics=("parallel", "parallel", "arbitrary"),
                vmem_limit_bytes=vmem_limit),
        )(x3)
        pooled = jnp.sum(pooled_sum[:, :, :, 0], axis=0) * (1.0 / HW)   # (N, Cin)

        # Tiny attention branch (N*Cin numbers) in plain JAX, f32 throughout.
        a = pooled @ jnp.transpose(w_atten).astype(jnp.float32)
        g = a.reshape(N, GN_GROUPS, Cin // GN_GROUPS)
        gmean = jnp.mean(g, axis=-1, keepdims=True)
        gvar = jnp.mean(jnp.square(g - gmean), axis=-1, keepdims=True)
        gn = ((g - gmean) * lax.rsqrt(gvar + GN_EPS)).reshape(N, Cin)
        gn = (gn * gn_gamma.astype(jnp.float32)[None, :]
              + gn_beta.astype(jnp.float32)[None, :])
        scale = 1.0 + jax.nn.sigmoid(gn)                                # (N, Cin)

        # Fold x + x*atten into the conv weights once per image (f32 fold,
        # single cast), so the streaming kernel is a pure MXU matmul.
        w_scaled = (w_conv_f32[None, :, :] * scale[:, None, :]).astype(cdt)

        # Pass 2: streaming out_tile = w_scaled_n @ x_tile.
        out3 = pl.pallas_call(
            _fsm_stream_kernel,
            out_shape=jax.ShapeDtypeStruct((N, Cout, HWp), odt),
            grid_spec=pltpu.PrefetchScalarGridSpec(
                num_scalar_prefetch=0,
                grid=(N, num_t),
                in_specs=[
                    pl.BlockSpec((1, Cout, Cin), lambda n, t: (n, 0, 0)),
                    pl.BlockSpec((1, Cin, t_hw), lambda n, t: (n, 0, t)),
                ],
                out_specs=pl.BlockSpec((1, Cout, t_hw), lambda n, t: (n, 0, t)),
            ),
            compiler_params=pltpu.CompilerParams(
                dimension_semantics=("parallel", "parallel"),
                vmem_limit_bytes=vmem_limit),
        )(w_scaled, x3)

    if HWp != HW:
        out3 = out3[:, :, :HW]
    return out3.reshape(N, Cout, H, W)


def _reference_forward(x, w_atten, gamma, beta, w_conv):
    """Pure-JAX f32 reference matching the PyTorch module semantics."""
    N, C, H, W = x.shape
    pooled = jnp.mean(x, axis=(2, 3))                               # (N, C)
    a = pooled @ w_atten.T                                          # (N, C)
    g = a.reshape(N, GN_GROUPS, C // GN_GROUPS)
    mean = jnp.mean(g, axis=-1, keepdims=True)
    var = jnp.mean((g - mean) ** 2, axis=-1, keepdims=True)
    gn = ((g - mean) / jnp.sqrt(var + GN_EPS)).reshape(N, C)
    gn = gn * gamma[None, :] + beta[None, :]
    atten = jax.nn.sigmoid(gn)[:, :, None, None]                    # (N, C, 1, 1)
    y = x + x * atten
    return jnp.einsum('nchw,oc->nohw', y, w_conv)


if __name__ == "__main__":
    # GroupNorm uses 32 groups (detectron2 default) -> in_chan multiple of 32.
    N, Cin, Cout, H, W = 2, 64, 32, 16, 16

    key = jax.random.PRNGKey(0)
    kx, ka, kc, kx2 = jax.random.split(key, 4)

    x = jax.random.normal(kx, (N, Cin, H, W), dtype=jnp.float32)

    # c2_xavier_fill == kaiming_uniform_(a=1): U(-b, b), b = sqrt(3 / fan_in)
    b_init = (3.0 / Cin) ** 0.5
    w_atten = jax.random.uniform(ka, (Cin, Cin), jnp.float32, -b_init, b_init)
    w_conv = jax.random.uniform(kc, (Cout, Cin), jnp.float32, -b_init, b_init)

    # GroupNorm affine params (PyTorch init: weight=1, bias=0)
    gn_gamma = jnp.ones((Cin,), jnp.float32)
    gn_beta = jnp.zeros((Cin,), jnp.float32)

    ref = _reference_forward(x, w_atten, gn_gamma, gn_beta, w_conv)

    # (A) fused single-pass kernel, bf16 streaming dtype, f32 accumulation.
    out_a = feature_selection_module(x, w_atten, gn_gamma, gn_beta, w_conv,
                                     compute_dtype=jnp.bfloat16)
    out_a = jax.block_until_ready(out_a)
    assert out_a.shape == (N, Cout, H, W) and out_a.dtype == x.dtype
    assert jnp.allclose(out_a, ref, rtol=3e-2, atol=3e-2), "fused bf16 mismatch"

    # (B) two-pass fallback (pool kernel + streaming matmul), f32, with small
    # forced tiles so the tiled + split-reduction pool path is exercised.
    out_b = feature_selection_module(x[:1], w_atten, gn_gamma, gn_beta, w_conv,
                                     compute_dtype=jnp.float32,
                                     spatial_tile_target=128,
                                     force_two_pass=True)
    out_b = jax.block_until_ready(out_b)
    assert jnp.allclose(out_b, ref[:1], rtol=1e-4, atol=1e-4), "two-pass f32 mismatch"

    # (C) ragged spatial extent (HW=99 -> zero-padded to 128), fused, bf16.
    Hc, Wc = 11, 9
    xc = jax.random.normal(kx2, (N, Cin, Hc, Wc), dtype=jnp.float32)
    refc = _reference_forward(xc, w_atten, gn_gamma, gn_beta, w_conv)
    out_c = feature_selection_module(xc, w_atten, gn_gamma, gn_beta, w_conv,
                                     compute_dtype=jnp.bfloat16)
    out_c = jax.block_until_ready(out_c)
    assert out_c.shape == (N, Cout, Hc, Wc)
    assert jnp.allclose(out_c, refc, rtol=3e-2, atol=3e-2), "ragged fused mismatch"

    print("KERNEL_OK")
</pallas_src>

<mosaic_0001>
module attributes {stable_mosaic.version = 11 : i64} {
  func.func @_fsm_fused_kernel(%arg0: i32, %arg1: memref<64x64xf32, #tpu.memory_space<vmem>>, %arg2: memref<64x32xf32, #tpu.memory_space<vmem>>, %arg3: memref<32x64xf32, #tpu.memory_space<vmem>>, %arg4: memref<1x64xf32, #tpu.memory_space<vmem>>, %arg5: memref<1x64xf32, #tpu.memory_space<vmem>>, %arg6: memref<32x64xf32, #tpu.memory_space<vmem>>, %arg7: memref<1x64x256xbf16, #tpu.memory_space<vmem>>, %arg8: memref<1x32x256xf32, #tpu.memory_space<vmem>>) attributes {dimension_semantics = [#tpu.dimension_semantics<parallel>], iteration_bounds = array<i64: 2>, scalar_prefetch = 0 : i64, scratch_operands = 0 : i64, tpu.core_type = #tpu.core_type<tc>, window_params = [{pipeline_mode = #tpu.pipeline_mode<synchronous>, transform_indices = @transform_0, window_bounds = array<i64: 64, 64>}, {pipeline_mode = #tpu.pipeline_mode<synchronous>, transform_indices = @transform_1, window_bounds = array<i64: 64, 32>}, {pipeline_mode = #tpu.pipeline_mode<synchronous>, transform_indices = @transform_2, window_bounds = array<i64: 32, 64>}, {pipeline_mode = #tpu.pipeline_mode<synchronous>, transform_indices = @transform_3, window_bounds = array<i64: 1, 64>}, {pipeline_mode = #tpu.pipeline_mode<synchronous>, transform_indices = @transform_4, window_bounds = array<i64: 1, 64>}, {pipeline_mode = #tpu.pipeline_mode<synchronous>, transform_indices = @transform_5, window_bounds = array<i64: 32, 64>}, {transform_indices = @transform_6, window_bounds = array<i64: 1, 64, 256>}, {transform_indices = @transform_7, window_bounds = array<i64: 1, 32, 256>}]} {
    %c0 = arith.constant 0 : index
    %c0_0 = arith.constant 0 : index
    %c0_1 = arith.constant 0 : index
    %0 = vector.load %arg7[%c0, %c0_0, %c0_1] : memref<1x64x256xbf16, #tpu.memory_space<vmem>>, vector<1x64x256xbf16>
    %1 = vector.shape_cast %0 : vector<1x64x256xbf16> to vector<64x256xbf16>
    %2 = arith.extf %1 : vector<64x256xbf16> to vector<64x256xf32>
    %cst = arith.constant dense<0.000000e+00> : vector<64xf32>
    %3 = vector.multi_reduction <add>, %2, %cst [1] : vector<64x256xf32> to vector<64xf32>
    %4 = vector.shape_cast %3 : vector<64xf32> to vector<64x1xf32>
    %cst_2 = arith.constant 3.906250e-03 : f32
    %5 = vector.broadcast %cst_2 : f32 to vector<64x1xf32>
    %6 = arith.mulf %4, %5 : vector<64x1xf32>
    %7 = tpu.iota {dimensions = array<i32: 0>} : vector<64x64xi32>
    %8 = tpu.iota {dimensions = array<i32: 1>} : vector<64x64xi32>
    %9 = arith.cmpi eq, %7, %8 : vector<64x64xi32>
    %10 = arith.extui %9 : vector<64x64xi1> to vector<64x64xi32>
    %11 = arith.sitofp %10 : vector<64x64xi32> to vector<64x64xf32>
    %12 = vector.broadcast %6 : vector<64x1xf32> to vector<64x64xf32>
    %13 = arith.mulf %12, %11 : vector<64x64xf32>
    %cst_3 = arith.constant dense<0.000000e+00> : vector<64xf32>
    %14 = vector.multi_reduction <add>, %13, %cst_3 [0] : vector<64x64xf32> to vector<64xf32>
    %15 = vector.shape_cast %14 : vector<64xf32> to vector<1x64xf32>
    %c0_4 = arith.constant 0 : index
    %c0_5 = arith.constant 0 : index
    %16 = vector.load %arg1[%c0_4, %c0_5] : memref<64x64xf32, #tpu.memory_space<vmem>>, vector<64x64xf32>
    %cst_6 = arith.constant dense<0.000000e+00> : vector<1x64xf32>
    %17 = tpu.matmul %15, %16, %cst_6 {dimension_numbers = #tpu.dot_dimension_numbers<[1], [0], [0], [1], [0, 0, 1, 1], [], []>} : vector<1x64xf32>, vector<64x64xf32>, vector<1x64xf32> -> vector<1x64xf32>
    %c0_7 = arith.constant 0 : index
    %c0_8 = arith.constant 0 : index
    %18 = vector.load %arg2[%c0_7, %c0_8] : memref<64x32xf32, #tpu.memory_space<vmem>>, vector<64x32xf32>
    %cst_9 = arith.constant dense<0.000000e+00> : vector<1x32xf32>
    %19 = tpu.matmul %17, %18, %cst_9 {dimension_numbers = #tpu.dot_dimension_numbers<[1], [0], [0], [1], [0, 0, 1, 1], [], []>} : vector<1x64xf32>, vector<64x32xf32>, vector<1x32xf32> -> vector<1x32xf32>
    %c0_10 = arith.constant 0 : index
    %c0_11 = arith.constant 0 : index
    %20 = vector.load %arg3[%c0_10, %c0_11] : memref<32x64xf32, #tpu.memory_space<vmem>>, vector<32x64xf32>
    %cst_12 = arith.constant dense<0.000000e+00> : vector<1x64xf32>
    %21 = tpu.matmul %19, %20, %cst_12 {dimension_numbers = #tpu.dot_dimension_numbers<[1], [0], [0], [1], [0, 0, 1, 1], [], []>} : vector<1x32xf32>, vector<32x64xf32>, vector<1x64xf32> -> vector<1x64xf32>
    %22 = arith.subf %17, %21 : vector<1x64xf32>
    %23 = arith.mulf %22, %22 : vector<1x64xf32>
    %c0_13 = arith.constant 0 : index
    %c0_14 = arith.constant 0 : index
    %24 = vector.load %arg2[%c0_13, %c0_14] : memref<64x32xf32, #tpu.memory_space<vmem>>, vector<64x32xf32>
    %cst_15 = arith.constant dense<0.000000e+00> : vector<1x32xf32>
    %25 = tpu.matmul %23, %24, %cst_15 {dimension_numbers = #tpu.dot_dimension_numbers<[1], [0], [0], [1], [0, 0, 1, 1], [], []>} : vector<1x64xf32>, vector<64x32xf32>, vector<1x32xf32> -> vector<1x32xf32>
    %c0_16 = arith.constant 0 : index
    %c0_17 = arith.constant 0 : index
    %26 = vector.load %arg3[%c0_16, %c0_17] : memref<32x64xf32, #tpu.memory_space<vmem>>, vector<32x64xf32>
    %cst_18 = arith.constant dense<0.000000e+00> : vector<1x64xf32>
    %27 = tpu.matmul %25, %26, %cst_18 {dimension_numbers = #tpu.dot_dimension_numbers<[1], [0], [0], [1], [0, 0, 1, 1], [], []>} : vector<1x32xf32>, vector<32x64xf32>, vector<1x64xf32> -> vector<1x64xf32>
    %cst_19 = arith.constant 9.99999974E-6 : f32
    %28 = vector.broadcast %cst_19 : f32 to vector<1x64xf32>
    %29 = arith.addf %27, %28 : vector<1x64xf32>
    %30 = math.rsqrt %29 : vector<1x64xf32>
    %31 = arith.mulf %22, %30 : vector<1x64xf32>
    %c0_20 = arith.constant 0 : index
    %c0_21 = arith.constant 0 : index
    %32 = vector.load %arg4[%c0_20, %c0_21] : memref<1x64xf32, #tpu.memory_space<vmem>>, vector<1x64xf32>
    %33 = arith.mulf %31, %32 : vector<1x64xf32>
    %c0_22 = arith.constant 0 : index
    %c0_23 = arith.constant 0 : index
    %34 = vector.load %arg5[%c0_22, %c0_23] : memref<1x64xf32, #tpu.memory_space<vmem>>, vector<1x64xf32>
    %35 = arith.addf %33, %34 : vector<1x64xf32>
    %36 = arith.negf %35 : vector<1x64xf32>
    %37 = math.exp %36 : vector<1x64xf32>
    %cst_24 = arith.constant 1.000000e+00 : f32
    %38 = vector.broadcast %cst_24 : f32 to vector<1x64xf32>
    %39 = arith.addf %38, %37 : vector<1x64xf32>
    %40 = arith.divf %38, %39 : vector<1x64xf32>
    %cst_25 = arith.constant 1.000000e+00 : f32
    %41 = vector.broadcast %cst_25 : f32 to vector<1x64xf32>
    %42 = arith.addf %41, %40 : vector<1x64xf32>
    %c0_26 = arith.constant 0 : index
    %c0_27 = arith.constant 0 : index
    %43 = vector.load %arg6[%c0_26, %c0_27] : memref<32x64xf32, #tpu.memory_space<vmem>>, vector<32x64xf32>
    %44 = vector.broadcast %42 : vector<1x64xf32> to vector<32x64xf32>
    %45 = arith.mulf %43, %44 : vector<32x64xf32>
    %46 = arith.truncf %45 : vector<32x64xf32> to vector<32x64xbf16>
    %cst_28 = arith.constant dense<0.000000e+00> : vector<32x256xf32>
    %47 = tpu.matmul %46, %1, %cst_28 {dimension_numbers = #tpu.dot_dimension_numbers<[1], [0], [0], [1], [0, 0, 1, 1], [], []>} : vector<32x64xbf16>, vector<64x256xbf16>, vector<32x256xf32> -> vector<32x256xf32>
    %c0_29 = arith.constant 0 : index
    %c0_30 = arith.constant 0 : index
    %c0_31 = arith.constant 0 : index
    %48 = vector.load %arg8[%c0_29, %c0_30, %c0_31] : memref<1x32x256xf32, #tpu.memory_space<vmem>>, vector<1x32x256xf32>
    %49 = vector.shape_cast %48 : vector<1x32x256xf32> to vector<32x256xf32>
    %50 = vector.shape_cast %47 : vector<32x256xf32> to vector<1x32x256xf32>
    tpu.vector_store %arg8[%c0_29, %c0_30, %c0_31], %50 {strides = array<i32>} : memref<1x32x256xf32, #tpu.memory_space<vmem>>, vector<1x32x256xf32>,
    return
  }
  func.func @transform_0(%arg0: i32) -> (i32, i32) {
    %c0_i32 = arith.constant 0 : i32
    %c0_i32_0 = arith.constant 0 : i32
    %c0_i32_1 = arith.constant 0 : i32
    return %c0_i32, %c0_i32_0 : i32, i32
  }
  func.func @transform_1(%arg0: i32) -> (i32, i32) {
    %c0_i32 = arith.constant 0 : i32
    %c0_i32_0 = arith.constant 0 : i32
    %c0_i32_1 = arith.constant 0 : i32
    return %c0_i32, %c0_i32_0 : i32, i32
  }
  func.func @transform_2(%arg0: i32) -> (i32, i32) {
    %c0_i32 = arith.constant 0 : i32
    %c0_i32_0 = arith.constant 0 : i32
    %c0_i32_1 = arith.constant 0 : i32
    return %c0_i32, %c0_i32_0 : i32, i32
  }
  func.func @transform_3(%arg0: i32) -> (i32, i32) {
    %c0_i32 = arith.constant 0 : i32
    %c0_i32_0 = arith.constant 0 : i32
    %c0_i32_1 = arith.constant 0 : i32
    return %c0_i32, %c0_i32_0 : i32, i32
  }
  func.func @transform_4(%arg0: i32) -> (i32, i32) {
    %c0_i32 = arith.constant 0 : i32
    %c0_i32_0 = arith.constant 0 : i32
    %c0_i32_1 = arith.constant 0 : i32
    return %c0_i32, %c0_i32_0 : i32, i32
  }
  func.func @transform_5(%arg0: i32) -> (i32, i32) {
    %c0_i32 = arith.constant 0 : i32
    %c0_i32_0 = arith.constant 0 : i32
    %c0_i32_1 = arith.constant 0 : i32
    return %c0_i32, %c0_i32_0 : i32, i32
  }
  func.func @transform_6(%arg0: i32) -> (i32, i32, i32) {
    %c0_i32 = arith.constant 0 : i32
    %c0_i32_0 = arith.constant 0 : i32
    %c0_i32_1 = arith.constant 0 : i32
    return %arg0, %c0_i32, %c0_i32_0 : i32, i32, i32
  }
  func.func @transform_7(%arg0: i32) -> (i32, i32, i32) {
    %c0_i32 = arith.constant 0 : i32
    %c0_i32_0 = arith.constant 0 : i32
    %c0_i32_1 = arith.constant 0 : i32
    return %arg0, %c0_i32, %c0_i32_0 : i32, i32, i32
  }
}

</mosaic_0001>

<bundles_post_ra>
// kernel: feature_selection_module.1
= control target key start
LH: loop header
LB: loop body
LE: loop exit
PB: predicated region body
PF: predicated region fallthrough
CT: control target
= control target key end

     0   :  { %s1207_s24 = smov 0   ;;  %s1433_s0 = inlined_call_operand.vmem [shape: f32[64,64], index: 0, kind: input, shape index: {}]   ;;  %s1434_s1 = inlined_call_operand.vmem [shape: f32[64,32], index: 1, kind: input, shape index: {}]   ;;  %s1435_s2 = inlined_call_operand.vmem [shape: f32[32,64], index: 2, kind: input, shape index: {}]   ;;  %s1436_s3 = inlined_call_operand.vmem [shape: f32[1,64], index: 3, kind: input, shape index: {}]   ;;  %s1437_s4 = inlined_call_operand.vmem [shape: f32[1,64], index: 4, kind: input, shape index: {}]   ;;  %s1438_s5 = inlined_call_operand.vmem [shape: f32[32,64], index: 5, kind: input, shape index: {}]   ;;  %s1439_s6 = inlined_call_operand.vmem [shape: bf16[2,64,256], index: 6, kind: input, shape index: {}]   ;;  %s1440_s7 = inlined_call_operand.vmem [shape: f32[2,32,256], index: 7, kind: output, shape index: {}]  }
   0x1 LB: > { %s978_s25 = sadd.s32 4294967295, %s1162_s24   ;;  %p982_p0 = scmp.ge.s32.totalorder %s1162_s24, 1  ;;  %s1162_s24 = sphi %s1207_s24, %s17_s24  }
   0x2   : > { %p237_p1 = scmp.lt.s32.totalorder %s1162_s24, 3 }
   0x4   : > { %p238_p2 = pnand %p982_p0, %p237_p1 }
   0x5   : > { %p269_p3 = scmp.lt.s32.totalorder (!%p238_p2), %s978_s25, 1 }
   0x6   : > { %241 = sbr.rel (%p238_p2) target bundleno = 1431 (0x597), region = 48 }
   0xb   : > { %v1164_v0 = vmov 0.0   ;;  %s1442_s25 = smov (!%p269_p3, %s978_s25), 1  ;;  %v408_v33 = vld [vmem:[%s1433_s0 + $0x38] sm:$0xff]  ;;  %v407_v34 = vld [vmem:[%s1433_s0 + $0x30] sm:$0xff]  ;;  %v406_v35 = vld [vmem:[%s1433_s0 + $0x28] sm:$0xff]  ;;  %vm1165_vm0 = vmmov 0   ;;  %v336_v41 = vlaneseq }
   0xc   : > { %1052 = vmatprep.subr.mxu1 %v1164_v0  ;;  %1090 = vmatprep.subr.mxu0 %v1164_v0  ;;  %s1013_s26 = sshll.u32 %s1442_s25, 6  ;;  %v405_v36 = vld [vmem:[%s1433_s0 + $0x20] sm:$0xff]  ;;  %v404_v37 = vld [vmem:[%s1433_s0 + $0x18] sm:$0xff]  ;;  %v403_v38 = vld [vmem:[%s1433_s0 + $0x10] sm:$0xff]  ;;  %vm379_vm7 = vcmask 523264   ;;  %vm567_vm10 = vcmask 261120  }
   0xd   : > { %s273_s29 = scalar_lea.vmem %s1439_s6, %s1013_s26  ;;  %1053 = vmatpush3.msra.mxu1 %v408_v33  ;;  %v402_v39 = vld [vmem:[%s1433_s0 + $0x8] sm:$0xff]  ;;  %1068 = vmatprep.mubr.msk.f32.mxu1 %vm1165_vm0, %v1164_v0  ;;  %v401_v40 = vld [vmem:[%s1433_s0] sm:$0xff]  ;;  %v1293_v42 = vshrl.u32 %v336_v41, 7  ;;  %v346_v43 = vand.u32 127, %v336_v41  ;;  %s278_s21 = scalar_lea.vmem %s1440_s7, %s1013_s26 }
   0xe   : > { %v1225_v1 = vld [vmem:[%s273_s29] sm:$0xff]  ;;  %v1227_v2 = vld [vmem:[%s273_s29 + $0x10] sm:$0xff]  ;;  %v1229_v3 = vld [vmem:[%s273_s29 + $0x8] sm:$0xff]  ;;  %1054 = vmatprep.subr.mxu1 %v1164_v0  ;;  %1098 = vmatprep.mubr.msk.f32.mxu0 %vm1165_vm0, %v1164_v0 }
   0xf   : > { %v288_v4 = vunpack.c.l.bf16 %v1225_v1  ;;  %v289_v5 = vunpack.c.h.bf16 %v1225_v1  ;;  %v292_v6 = vunpack.c.l.bf16 %v1227_v2  ;;  %v293_v7 = vunpack.c.h.bf16 %v1227_v2  ;;  %v1235_v8 = vld [vmem:[%s273_s29 + $0x18] sm:$0xff]  ;;  %v1237_v9 = vld [vmem:[%s273_s29 + $0x20] sm:$0xff]  ;;  %v1243_v14 = vld [vmem:[%s273_s29 + $0x28] sm:$0xff]  ;;  %1055 = vmatpush3.msra.mxu1 %v407_v34 }
  0x10   : > { %v290_v10 = vunpack.c.l.bf16 %v1229_v3  ;;  %v291_v11 = vunpack.c.h.bf16 %v1229_v3  ;;  %v294_v12 = vunpack.c.l.bf16 %v1235_v8  ;;  %v295_v13 = vunpack.c.h.bf16 %v1235_v8  ;;  %v1249_v23 = vld [vmem:[%s273_s29 + $0x30] sm:$0xff]  ;;  %v1251_v24 = vld [vmem:[%s273_s29 + $0x38] sm:$0xff]  ;;  %1056 = vmatprep.subr.mxu1 %v1164_v0 }
  0x11   : > { %v304_v15 = vadd.f32 %v289_v5, %v288_v4  ;;  %v310_v16 = vadd.f32 %v293_v7, %v292_v6  ;;  %v296_v17 = vunpack.c.l.bf16 %v1237_v9  ;;  %v297_v18 = vunpack.c.h.bf16 %v1237_v9  ;;  %1057 = vmatpush3.msra.mxu1 %v406_v35 }
  0x12   : > { %v307_v19 = vadd.f32 %v291_v11, %v290_v10  ;;  %v313_v20 = vadd.f32 %v295_v13, %v294_v12  ;;  %v298_v21 = vunpack.c.l.bf16 %v1243_v14  ;;  %v299_v22 = vunpack.c.h.bf16 %v1243_v14  ;;  %1058 = vmatprep.subr.mxu1 %v1164_v0 }
  0x13   : > { %305 = vadd.xlane.f32.xlu0 %v304_v15  ;;  %311 = vadd.xlane.f32.xlu1 %v310_v16  ;;  %v316_v25 = vadd.f32 %v297_v18, %v296_v17  ;;  %v300_v26 = vunpack.c.l.bf16 %v1249_v23  ;;  %v301_v28 = vunpack.c.h.bf16 %v1249_v23  ;;  %v302_v29 = vunpack.c.l.bf16 %v1251_v24 }
  0x14   : > { %v319_v27 = vadd.f32 %v299_v22, %v298_v21  ;;  %v303_v30 = vunpack.c.h.bf16 %v1251_v24  ;;  %1059 = vmatpush3.msra.mxu1 %v405_v36  ;;  %v339_v44 = vadd.s32 16, %v1293_v42  ;;  %v338_v45 = vadd.s32 8, %v1293_v42 }
  0x15   : > { %v322_v31 = vadd.f32 %v301_v28, %v300_v26  ;;  %1060 = vmatprep.subr.mxu1 %v1164_v0  ;;  %v340_v46 = vadd.s32 24, %v1293_v42  ;;  %vm347_vm1 = vcmp.eq.s32.totalorder %v1293_v42, %v346_v43  ;;  %v341_v49 = vadd.s32 32, %v1293_v42 }
  0x16   : > { %v325_v32 = vadd.f32 %v303_v30, %v302_v29  ;;  %1061 = vmatpush3.msra.mxu1 %v404_v37  ;;  %vm349_vm2 = vcmp.eq.s32.totalorder %v339_v44, %v346_v43  ;;  %vm348_vm3 = vcmp.eq.s32.totalorder %v338_v45, %v346_v43  ;;  %v342_v51 = vadd.s32 40, %v1293_v42 }
  0x17   : > { %308 = vadd.xlane.f32.xlu0 %v307_v19  ;;  %314 = vadd.xlane.f32.xlu1 %v313_v20  ;;  %vm350_vm4 = vcmp.eq.s32.totalorder %v340_v46, %v346_v43  ;;  %v987_v52 = vsel %vm347_vm1, 1.0, %v1164_v0  ;;  %v989_v53 = vsel %vm349_vm2, 1.0, %v1164_v0  ;;  %v988_v55 = vsel %vm348_vm3, 1.0, %v1164_v0 }
  0x18   : > { %1062 = vmatprep.subr.mxu1 %v1164_v0  ;;  %v990_v57 = vsel %vm350_vm4, 1.0, %v1164_v0  ;;  %vm351_vm5 = vcmp.eq.s32.totalorder %v341_v49, %v346_v43  ;;  %v343_v59 = vadd.s32 48, %v1293_v42  ;;  %v344_v60 = vadd.s32 56, %v1293_v42 }
  0x19   : > { %1063 = vmatpush3.msra.mxu1 %v403_v38  ;;  %vm352_vm6 = vcmp.eq.s32.totalorder %v342_v51, %v346_v43  ;;  %v991_v7 = vsel %vm351_vm5, 1.0, %v1164_v0  ;;  %v488_v51 = vld [vmem:[%s1434_s1 + $0x30] sm:$0xff] }
  0x1a   : > { %1064 = vmatprep.subr.mxu1 %v1164_v0  ;;  %v992_v11 = vsel %vm352_vm6, 1.0, %v1164_v0  ;;  %vm353_vm8 = vcmp.eq.s32.totalorder %v343_v59, %v346_v43  ;;  %vm354_vm9 = vcmp.eq.s32.totalorder %v344_v60, %v346_v43  ;;  %v565_v59 = vld [vmem:[%s1435_s2 + $0x10] sm:$0xff]  ;;  %v564_v60 = vld [vmem:[%s1435_s2 + $0x8] sm:$0xff] }
  0x1b   : > { %317 = vadd.xlane.f32.xlu0 %v316_v25  ;;  %320 = vadd.xlane.f32.xlu1 %v319_v27  ;;  %v993_v26 = vsel %vm353_vm8, 1.0, %v1164_v0  ;;  %v994_v28 = vsel %vm354_vm9, 1.0, %v1164_v0 }
  0x1c   : > { %1065 = vmatpush3.msra.mxu1 %v402_v39 }
  0x1d   : > { %1066 = vmatprep.subr.mxu1 %v1164_v0 }
  0x1e   : > { %1067 = vmatpush3.msra.mxu1 %v401_v40 }
  0x1f   : > { %323 = vadd.xlane.f32.xlu0 %v322_v31  ;;  %326 = vadd.xlane.f32.xlu1 %v325_v32 }
  0x20   : > { %1071 = vmatprep.subr.mxu1 %v1164_v0 }
  0x9c   : > { %v306_v47 = vpop.xlane.xlu0 %305  ;;  %v312_v48 = vpop.xlane.xlu1 %311 }
  0x9d   : > { %v328_v50 = vmul.f32 0.00390625, %v306_v47  ;;  %v330_v54 = vmul.f32 0.00390625, %v312_v48 }
  0x9f   : > { %v371_v61 = vmul.f32 %v987_v52, %v328_v50  ;;  %v373_v4 = vmul.f32 %v989_v53, %v330_v54  ;;  %v489_v50 = vld [vmem:[%s1434_s1 + $0x38] sm:$0xff]  ;;  %v487_v52 = vld [vmem:[%s1434_s1 + $0x28] sm:$0xff]  ;;  %v486_v53 = vld [vmem:[%s1434_s1 + $0x20] sm:$0xff] }
  0xa0   : > { %v309_v56 = vpop.xlane.xlu0 %308  ;;  %v315_v58 = vpop.xlane.xlu1 %314  ;;  %v485_v54 = vld [vmem:[%s1434_s1 + $0x18] sm:$0xff] }
  0xa1   : > { %v329_v62 = vmul.f32 0.00390625, %v309_v56  ;;  %v331_v63 = vmul.f32 0.00390625, %v315_v58  ;;  %v380_v13 = vsel %vm379_vm7, %v371_v61, 0.0  ;;  %v383_v19 = vsel %vm379_vm7, %v373_v4, 0.0  ;;  %v483_v56 = vld [vmem:[%s1434_s1 + $0x8] sm:$0xff]  ;;  %v566_v58 = vld [vmem:[%s1435_s2 + $0x18] sm:$0xff] }
  0xa2   : > { %1091 = vmatpush3.msra.mxu0 %v566_v58 }
  0xa3   : > { %v372_v5 = vmul.f32 %v988_v55, %v329_v62  ;;  %v374_v6 = vmul.f32 %v990_v57, %v331_v63  ;;  %v484_v55 = vld [vmem:[%s1434_s1 + $0x10] sm:$0xff]  ;;  %v482_v57 = vld [vmem:[%s1434_s1] sm:$0xff]  ;;  %1092 = vmatprep.subr.mxu0 %v1164_v0 }
  0xa4   : > { %v318_v10 = vpop.xlane.xlu0 %317  ;;  %v321_v12 = vpop.xlane.xlu1 %320  ;;  %1093 = vmatpush3.msra.mxu0 %v565_v59  ;;  %v563_v63 = vld [vmem:[%s1435_s2] sm:$0xff] }
  0xa5   : > { %v381_v15 = vsel %vm379_vm7, %v372_v5, 0.0  ;;  %v332_v16 = vmul.f32 0.00390625, %v318_v10  ;;  %v333_v17 = vmul.f32 0.00390625, %v321_v12  ;;  %v385_v20 = vsel %vm379_vm7, %v374_v6, 0.0  ;;  %1094 = vmatprep.subr.mxu0 %v1164_v0 }
  0xa6   : > { %v382_v18 = vadd.f32 %v381_v15, %v380_v13  ;;  %1095 = vmatpush3.msra.mxu0 %v564_v60  ;;  %v1008_v15 = vcombine.high %v1249_v23, %v1251_v24 }
  0xa7   : > { %v375_v21 = vmul.f32 %v991_v7, %v332_v16  ;;  %v376_v22 = vmul.f32 %v992_v11, %v333_v17  ;;  %1096 = vmatprep.subr.mxu0 %v1164_v0  ;;  %v1007_v16 = vcombine.low %v1249_v23, %v1251_v24  ;;  %v1005_v17 = vcombine.low %v1237_v9, %v1243_v14 }
  0xa8   : > { %v384_v25 = vadd.f32 %v383_v19, %v382_v18  ;;  %v324_v27 = vpop.xlane.xlu0 %323  ;;  %v327_v29 = vpop.xlane.xlu1 %326  ;;  %1097 = vmatpush3.msra.mxu0 %v563_v63  ;;  %v1166_v18 = vmov 0   ;;  %v1004_v19 = vcombine.high %v1227_v2, %v1235_v8  ;;  %v1002_v23 = vcombine.high %v1225_v1, %v1229_v3 }
  0xa9   : > { %v387_v30 = vsel %vm379_vm7, %v375_v21, 0.0  ;;  %v334_v31 = vmul.f32 0.00390625, %v324_v27  ;;  %v335_v32 = vmul.f32 0.00390625, %v327_v29  ;;  %v389_v34 = vsel %vm379_vm7, %v376_v22, 0.0  ;;  %1120 = vmatprep.subr.mxu0 %v1164_v0 }
  0xaa   : > { %v386_v33 = vadd.f32 %v385_v20, %v384_v25  ;;  %v1003_v20 = vcombine.low %v1227_v2, %v1235_v8  ;;  %v1001_v24 = vcombine.low %v1225_v1, %v1229_v3  ;;  %v791_v25 = vld [vmem:[%s1436_s3] sm:$0x1]  ;;  %v808_v29 = vsub.s32 0, %v1293_v42  ;;  %v805_v42 = vld [vmem:[%s1438_s5 + $0x18] sm:$0xff] }
  0xab   : > { %v377_v35 = vmul.f32 %v993_v26, %v334_v31  ;;  %v378_v36 = vmul.f32 %v994_v28, %v335_v32  ;;  %v793_v8 = vld [vmem:[%s1437_s4] sm:$0x1] }
  0xac   : > { %v388_v37 = vadd.f32 %v387_v30, %v386_v33  ;;  %v802_v32 = vld [vmem:[%s1438_s5] sm:$0xff]  ;;  %v803_v33 = vld [vmem:[%s1438_s5 + $0x8] sm:$0xff] }
  0xad   : > { %v391_v38 = vsel %vm379_vm7, %v377_v35, 0.0  ;;  %v393_v40 = vsel %vm379_vm7, %v378_v36, 0.0 }
  0xae   : > { %v390_v39 = vadd.f32 %v389_v34, %v388_v37 }
  0xb0   : > { %v392_v41 = vadd.f32 %v391_v38, %v390_v39  ;;  %v804_v38 = vld [vmem:[%s1438_s5 + $0x10] sm:$0xff] }
  0xb2   : > { %v394_v43 = vadd.f32 %v393_v40, %v392_v41 }
  0xb4   : > { %v395_v44 = vrot.slane %v394_v43, 4 }
  0xb6   : > { %v396_v45 = vadd.f32 %v395_v44, %v394_v43 }
  0xb8   : > { %v397_v46 = vrot.slane %v396_v45, 2 }
  0xba   : > { %v398_v47 = vadd.f32 %v397_v46, %v396_v45 }
  0xbc   : > { %v399_v48 = vrot.slane %v398_v47, 1 }
  0xbe   : > { %v400_v49 = vadd.f32 %v399_v48, %v398_v47 }
  0xc0   : > { %1069 = vmatmul.mubr.msk.f32.vlgmr.msra.gmra.mxu1 %vm379_vm7, %v400_v49 }
  0xc1   : > { %1072 = vmatpush3.msra.mxu1 %v489_v50  ;;  %1087 = vmatprep.mubr.msk.f32.mxu1 %vm1165_vm0, %v1164_v0 }
  0xc2   : > { %1073 = vmatprep.subr.mxu1 %v1164_v0 }
  0xc3   : > { %1074 = vmatpush3.msra.mxu1 %v488_v51 }
  0xc4   : > { %1075 = vmatprep.subr.mxu1 %v1164_v0 }
  0xc5   : > { %1076 = vmatpush3.msra.mxu1 %v487_v52 }
  0xc6   : > { %1077 = vmatprep.subr.mxu1 %v1164_v0 }
  0xc7   : > { %1078 = vmatpush3.msra.mxu1 %v486_v53 }
  0xc8   : > { %1079 = vmatprep.subr.mxu1 %v1164_v0 }
  0xc9   : > { %1080 = vmatpush3.msra.mxu1 %v485_v54 }
  0xca   : > { %1081 = vmatprep.subr.mxu1 %v1164_v0 }
  0xcb   : > { %1082 = vmatpush3.msra.mxu1 %v484_v55 }
  0xcc   : > { %1083 = vmatprep.subr.mxu1 %v1164_v0 }
  0xcd   : > { %1084 = vmatpush3.msra.mxu1 %v483_v56 }
  0xce   : > { %1085 = vmatprep.subr.mxu1 %v1164_v0 }
  0xcf   : > { %1086 = vmatpush3.msra.mxu1 %v482_v57 }
  0xd0   : > { %1101 = vmatprep.subr.mxu1 %v1164_v0 }
 0x180   : > { %v478_v61 = vpop.f32.mrf.mxu1 }
 0x181   : > { %1088 = vmatmul.mubr.msk.f32.vlgmr.msra.gmra.mxu1 %vm379_vm7, %v478_v61 }
 0x182   : > { %v1070_v62 = vpop.f32.mrf.mxu1  ;;  %1102 = vmatpush3.msra.mxu1 %v489_v50  ;;  %1117 = vmatprep.mubr.msk.f32.mxu1 %vm1165_vm0, %v1164_v0 }
 0x183   : > { %1103 = vmatprep.subr.mxu1 %v1164_v0 }
 0x184   : > { %1104 = vmatpush3.msra.mxu1 %v488_v51 }
 0x185   : > { %1105 = vmatprep.subr.mxu1 %v1164_v0 }
 0x186   : > { %1106 = vmatpush3.msra.mxu1 %v487_v52 }
 0x187   : > { %1107 = vmatprep.subr.mxu1 %v1164_v0 }
 0x188   : > { %1108 = vmatpush3.msra.mxu1 %v486_v53 }
 0x189   : > { %1109 = vmatprep.subr.mxu1 %v1164_v0 }
 0x18a   : > { %1110 = vmatpush3.msra.mxu1 %v485_v54 }
 0x18b   : > { %1111 = vmatprep.subr.mxu1 %v1164_v0 }
 0x18c   : > { %1112 = vmatpush3.msra.mxu1 %v484_v55 }
 0x18d   : > { %1113 = vmatprep.subr.mxu1 %v1164_v0 }
 0x18e   : > { %1114 = vmatpush3.msra.mxu1 %v483_v56 }
 0x18f   : > { %1115 = vmatprep.subr.mxu1 %v1164_v0 }
 0x190   : > { %1116 = vmatpush3.msra.mxu1 %v482_v57 }
 0x241   : > { %v559_v4 = vpop.f32.mrf.mxu1 }
 0x242   : > { %1099 = vmatmul.mubr.msk.f32.vlgmr.msra.gmra.mxu0 %vm567_vm10, %v559_v4 }
 0x243   : > { %v1089_v5 = vpop.f32.mrf.mxu1  ;;  %1121 = vmatpush3.msra.mxu0 %v566_v58  ;;  %1128 = vmatprep.mubr.msk.f32.mxu0 %vm1165_vm0, %v1164_v0 }
 0x244   : > { %1122 = vmatprep.subr.mxu0 %v1164_v0 }
 0x245   : > { %1123 = vmatpush3.msra.mxu0 %v565_v59 }
 0x246   : > { %1124 = vmatprep.subr.mxu0 %v1164_v0 }
 0x247   : > { %1125 = vmatpush3.msra.mxu0 %v564_v60 }
 0x248   : > { %1126 = vmatprep.subr.mxu0 %v1164_v0  ;;  %v1006_v0 = vcombine.high %v1237_v9, %v1243_v14 }
 0x249   : > { %1127 = vmatpush3.msra.mxu0 %v563_v63 }
 0x24a   : > { %870 = vmatprep.subr.bf16.mxu0 %v1008_v15 }
 0x302   : > { %v637_v6 = vpop.f32.mrf.mxu0 }
 0x303   : > { %v641_v7 = vsub.f32 %v478_v61, %v637_v6 }
 0x304   : > { %v1100_v10 = vpop.f32.mrf.mxu0 }
 0x305   : > { %v642_v11 = vmul.f32 %v641_v7, %v641_v7 }
 0x307   : > { %1118 = vmatmul.mubr.msk.f32.vlgmr.msra.gmra.mxu1 %vm379_vm7, %v642_v11 }
 0x3c7   : > { %v712_v12 = vpop.f32.mrf.mxu1 }
 0x3c8   : > { %1129 = vmatmul.mubr.msk.f32.vlgmr.msra.gmra.mxu0 %vm567_vm10, %v712_v12 }
 0x3c9   : > { %v1119_v13 = vpop.f32.mrf.mxu1  ;;  %871 = vmatpush1.bf16.msra.mxu0 %v1007_v16  ;;  %894 = vmatprep.mubr.bf16.mxu0 %v1166_v18 }
 0x3ca   : > { %872 = vmatprep.subr.bf16.mxu0 %v1006_v0 }
 0x3cd   : > { %873 = vmatpush1.bf16.msra.mxu0 %v1005_v17 }
 0x3ce   : > { %874 = vmatprep.subr.bf16.mxu0 %v1004_v19 }
 0x3d1   : > { %875 = vmatpush1.bf16.msra.mxu0 %v1003_v20 }
 0x3d2   : > { %876 = vmatprep.subr.bf16.mxu0 %v1002_v23 }
 0x3d5   : > { %877 = vmatpush1.bf16.msra.mxu0 %v1001_v24 }
 0x488   : > { %v785_v9 = vpop.f32.mrf.mxu0 }
 0x489   : > { %v786_v14 = vadd.f32 1e-05, %v785_v9 }
 0x48a   : > { %v1130_v21 = vpop.f32.mrf.mxu0 }
 0x48b   : > { %1150 = vrsqrt.f32 %v786_v14 }
 0x498   : > { %v1151_v22 = vpop.eup %1150 }
 0x499   : > { %v790_v2 = vmul.f32 %v1151_v22, %v641_v7 }
 0x49b   : > { %v792_v26 = vmul.f32 %v791_v25, %v790_v2 }
 0x49d   : > { %v794_v27 = vadd.f32 %v793_v8, %v792_v26 }
 0x49f   : > { %v1000_v28 = vmul.f32 -1.442695, %v794_v27 }
 0x4a1   : > { %1152 = vpow2.f32 %v1000_v28 }
 0x4ae   : > { %v1153_v1 = vpop.eup %1152 }
 0x4af   : > { %v798_v3 = vadd.f32 1.0, %v1153_v1 }
 0x4b1   : > { %1154 = vrcp.f32 %v798_v3 }
 0x4be   : > { %v1155_v30 = vpop.eup %1154 }
 0x4bf   : > { %v801_v31 = vadd.f32 1.0, %v1155_v30 }
 0x4c1   : > { %v809_v34 = vrot.slane %v801_v31, %v808_v29 }
 0x4c3   : > { %v810_v35 = vmul.f32 %v809_v34, %v802_v32  ;;  %v811_v36 = vmul.f32 %v809_v34, %v803_v33  ;;  %v812_v39 = vmul.f32 %v809_v34, %v804_v38  ;;  %v813_v40 = vmul.f32 %v809_v34, %v805_v42 }
 0x4c5   : > { %v814_v37 = vpack.c.bf16 %v811_v36, %v810_v35  ;;  %v815_v41 = vpack.c.bf16 %v813_v40, %v812_v39 }
 0x4c7   : > { %1009 = vmatmul.mubr.msk.bf16.vlgmr.msra.gmra.mxu0 %vm379_vm7, %v814_v37 }
 0x4c8   : > { %904 = vmatprep.mubr.bf16.mxu0 %v1166_v18 }
 0x4cf   : > { %1010 = vmatmul.mubr.msk.bf16.gmra.mxu0 %vm379_vm7, %v815_v41 }
 0x587   : > { %v896_v43 = vpop.f32.mrf.mxu0 }
 0x588   : > { %915 = vst [vmem:[%s278_s21] sm:$0xff] %v896_v43 }
 0x589   : > { %v898_v44 = vpop.f32.mrf.mxu0 }
 0x58a   : > { %916 = vst [vmem:[%s278_s21 + $0x8] sm:$0xff] %v898_v44 }
 0x58b   : > { %v900_v45 = vpop.f32.mrf.mxu0 }
 0x58c   : > { %917 = vst [vmem:[%s278_s21 + $0x10] sm:$0xff] %v900_v45 }
 0x58d   : > { %v902_v46 = vpop.f32.mrf.mxu0 }
 0x58e   : > { %918 = vst [vmem:[%s278_s21 + $0x18] sm:$0xff] %v902_v46 }
 0x58f   : > { %v906_v47 = vpop.f32.mrf.mxu0 }
 0x590   : > { %919 = vst [vmem:[%s278_s21 + $0x20] sm:$0xff] %v906_v47 }
 0x591   : > { %v908_v48 = vpop.f32.mrf.mxu0 }
 0x592   : > { %920 = vst [vmem:[%s278_s21 + $0x28] sm:$0xff] %v908_v48 }
 0x593   : > { %v910_v49 = vpop.f32.mrf.mxu0 }
 0x594   : > { %921 = vst [vmem:[%s278_s21 + $0x30] sm:$0xff] %v910_v49 }
 0x595   : > { %v912_v50 = vpop.f32.mrf.mxu0 }
 0x596   : > { %922 = vst [vmem:[%s278_s21 + $0x38] sm:$0xff] %v912_v50 }
 0x597 PF: > { %s17_s24 = sadd.s32 1, %s1162_s24  }
 0x598   : > { %p14_p4 = scmp.ge.s32.totalorder %s17_s24, 4  }
 0x59a   :  { %16 = sbr.rel (!%p14_p4) target bundleno = 1 (0x1), region = 78 }

</bundles_post_ra>
